<compile_context>
chip_gen: v7x
topology: tpu7x:2x2x1
jax: 0.10.0
libtpu: 0.0.40
codegen_flags: <defaults>
</compile_context>

<pallas_src>
import math

import jax
import jax.numpy as jnp
from jax.experimental import pallas as pl
from jax.experimental.pallas import tpu as pltpu


def _round_up(x, m):
    return ((x + m - 1) // m) * m


# ----------------------------- kernels --------------------------------------
# Weight arrives pre-transposed/padded as [K_pad, N_pad]; contraction is a
# plain (tm, tk) @ (tk, tn) jnp.dot -> MXU, f32 accumulation.

def _kernel_f32_bias(x_ref, w_ref, b_ref, o_ref):
    # f32 output: accumulate directly into the resident output block.
    k = pl.program_id(2)
    part = jnp.dot(x_ref[...], w_ref[...], preferred_element_type=jnp.float32)

    @pl.when(k == 0)
    def _():
        o_ref[...] = part + b_ref[...]

    @pl.when(k > 0)
    def _():
        o_ref[...] += part


def _kernel_f32_nobias(x_ref, w_ref, o_ref):
    k = pl.program_id(2)
    part = jnp.dot(x_ref[...], w_ref[...], preferred_element_type=jnp.float32)

    @pl.when(k == 0)
    def _():
        o_ref[...] = part

    @pl.when(k > 0)
    def _():
        o_ref[...] += part


def _kernel_acc_bias(x_ref, w_ref, b_ref, o_ref, acc_ref):
    # Non-f32 output: keep an f32 VMEM accumulator, finalize on the last k.
    k = pl.program_id(2)

    @pl.when(k == 0)
    def _():
        acc_ref[...] = jnp.zeros_like(acc_ref)

    acc_ref[...] += jnp.dot(x_ref[...], w_ref[...],
                            preferred_element_type=jnp.float32)

    @pl.when(k == pl.num_programs(2) - 1)
    def _():
        o_ref[...] = (acc_ref[...] + b_ref[...]).astype(o_ref.dtype)


def _kernel_acc_nobias(x_ref, w_ref, o_ref, acc_ref):
    k = pl.program_id(2)

    @pl.when(k == 0)
    def _():
        acc_ref[...] = jnp.zeros_like(acc_ref)

    acc_ref[...] += jnp.dot(x_ref[...], w_ref[...],
                            preferred_element_type=jnp.float32)

    @pl.when(k == pl.num_programs(2) - 1)
    def _():
        o_ref[...] = acc_ref[...].astype(o_ref.dtype)


# --------------------------- wrapper / params --------------------------------

_XLA_FALLBACK_MACS = 1 << 20  # below ~1M MACs, pad + pallas_call overhead dominates


def prepare_linear_params(weight, bias=None, dtype=None):
    """One-time prep of nn.Linear params ([out, in] layout).

    Pads N/K to 256-multiples and transposes the weight to [K_pad, N_pad] so
    the per-call path never touches the weight again (no per-call jnp.pad /
    transpose HBM round trips).
    """
    N, K = weight.shape
    dtype = dtype or weight.dtype

    N_pad = _round_up(N, 256)
    K_pad = _round_up(K, 256)

    # tn: lane-dense, >= 256; one N block when it comfortably fits.
    if N_pad <= 1024:
        tn = N_pad
    elif N_pad % 512 == 0:
        tn = 512
    else:
        tn = 256

    # tk: single K step when K is modest; else largest tile that divides K_pad
    # (capped at 1024 so double-buffered tiles stay safe on v7x's 64 MiB VMEM).
    if K_pad <= 2048:
        tk = K_pad
    else:
        tk = next(t for t in (1024, 512, 256) if K_pad % t == 0)

    w_pad = jnp.pad(weight, ((0, N_pad - N), (0, K_pad - K)))
    wt = jnp.asarray(w_pad.T, dtype=dtype)           # [K_pad, N_pad], cached

    if bias is not None:
        b2 = jnp.pad(bias, (0, N_pad - N)).astype(jnp.float32).reshape(1, N_pad)
    else:
        b2 = None

    return {"wt": wt, "b2": b2, "N": N, "K": K,
            "N_pad": N_pad, "K_pad": K_pad, "tn": tn, "tk": tk}


def pallas_linear(x, params):
    """x: [M, in_channels]; params from prepare_linear_params.
    Returns [M, out_channels] in x.dtype."""
    M, K = x.shape
    N = params["N"]
    assert K == params["K"], "in_channels mismatch"

    # ---- small-shape fast path (e.g. the tiny DGCNN classifier head) ----
    if M * N * K <= _XLA_FALLBACK_MACS:
        y = jnp.dot(x, params["wt"][:K, :N])
        if params["b2"] is not None:
            y = y + params["b2"][0, :N]
        return y.astype(x.dtype)

    N_pad, K_pad = params["N_pad"], params["K_pad"]
    tn, tk = params["tn"], params["tk"]

    # tm: as large as reasonable (raises FLOP/byte on the streamed weight).
    tm = _round_up(min(M, 512), 8)
    M_pad = _round_up(M, tm)

    # v7x has 2 TensorCores: guarantee >= 2 blocks on the parallel (i, j) axes.
    if (M_pad // tm) * (N_pad // tn) == 1 and tm % 16 == 0:
        tm //= 2

    grid = (M_pad // tm, N_pad // tn, K_pad // tk)

    x_p = x if (M_pad == M and K_pad == K) else jnp.pad(
        x, ((0, M_pad - M), (0, K_pad - K)))

    x_spec = pl.BlockSpec((tm, tk), lambda i, j, k: (i, k))
    w_spec = pl.BlockSpec((tk, tn), lambda i, j, k: (k, j))
    o_spec = pl.BlockSpec((tm, tn), lambda i, j, k: (i, j))
    b_spec = pl.BlockSpec((1, tn), lambda i, j, k: (0, j))

    out_dtype = x.dtype
    f32_out = jnp.dtype(out_dtype) == jnp.dtype(jnp.float32)

    # ---- generation-aware VMEM budget (75% of capacity; headroom over 2x
    #      the double-buffered tile footprint computed from actual dtypes) ----
    x_isz = jnp.dtype(x.dtype).itemsize
    w_isz = jnp.dtype(params["wt"].dtype).itemsize
    o_isz = jnp.dtype(out_dtype).itemsize
    footprint = (2 * tm * tk * x_isz + 2 * tk * tn * w_isz
                 + 2 * tm * tn * o_isz + 2 * tn * 4)
    if not f32_out:
        footprint += tm * tn * 4  # f32 accumulator scratch
    try:
        vmem_cap = pltpu.get_tpu_info().vmem_capacity_bytes
    except Exception:
        vmem_cap = 64 * 2**20  # conservative (v7x per-TC)
    vmem_limit = int(min(int(0.75 * vmem_cap),
                         max(32 * 2**20, 2 * footprint)))

    cparams = pltpu.CompilerParams(
        dimension_semantics=("parallel", "parallel", "arbitrary"),
        vmem_limit_bytes=vmem_limit)

    b2 = params["b2"]
    if f32_out:
        scratch = []
        if b2 is not None:
            kernel, in_specs, args = _kernel_f32_bias, [x_spec, w_spec, b_spec], (x_p, params["wt"], b2)
        else:
            kernel, in_specs, args = _kernel_f32_nobias, [x_spec, w_spec], (x_p, params["wt"])
    else:
        scratch = [pltpu.VMEM((tm, tn), jnp.float32)]
        if b2 is not None:
            kernel, in_specs, args = _kernel_acc_bias, [x_spec, w_spec, b_spec], (x_p, params["wt"], b2)
        else:
            kernel, in_specs, args = _kernel_acc_nobias, [x_spec, w_spec], (x_p, params["wt"])

    out = pl.pallas_call(
        kernel,
        out_shape=jax.ShapeDtypeStruct((M_pad, N_pad), out_dtype),
        grid_spec=pltpu.PrefetchScalarGridSpec(
            num_scalar_prefetch=0,
            grid=grid,
            in_specs=in_specs,
            out_specs=o_spec,
            scratch_shapes=scratch),
        compiler_params=cparams,
    )(*args)

    if M_pad != M or N_pad != N:
        out = out[:M, :N]
    return out


def init_linear_params(key, in_channels, out_channels, bias=True):
    """Matches nn.Linear + xavier_normal_(weight), zeros_(bias)."""
    std = math.sqrt(2.0 / (in_channels + out_channels))
    w = std * jax.random.normal(key, (out_channels, in_channels), dtype=jnp.float32)
    b = jnp.zeros((out_channels,), dtype=jnp.float32) if bias else None
    return w, b


if __name__ == "__main__":
    key = jax.random.PRNGKey(0)
    k1, k2, k3, k4, k5, k6 = jax.random.split(key, 6)

    # Case 1: tiny DGCNN-classifier-head shape -> XLA fast path.
    x1 = jax.random.normal(k1, (8, 32), dtype=jnp.float32)
    w1, b1 = init_linear_params(k2, 32, 64, bias=True)
    p1 = prepare_linear_params(w1, b1)
    y1 = jax.block_until_ready(pallas_linear(x1, p1))
    y1_ref = x1 @ w1.T + b1
    assert y1.shape == (8, 64)
    assert jnp.allclose(y1, y1_ref, atol=1e-4, rtol=1e-4), "mismatch (fast path)"

    # Case 2: unaligned shapes through the Pallas path (pad + slice), no bias.
    x2 = jax.random.normal(k3, (200, 160), dtype=jnp.float32)
    w2, _ = init_linear_params(k4, 160, 250, bias=False)
    p2 = prepare_linear_params(w2, None)
    y2 = jax.block_until_ready(pallas_linear(x2, p2))
    y2_ref = jnp.dot(x2, w2.T, precision="highest")
    assert y2.shape == (200, 250)
    assert jnp.allclose(y2, y2_ref, atol=2e-3, rtol=2e-3), "mismatch (pallas, no-bias)"

    # Case 3: aligned larger shape with bias -> multi-block parallel grid.
    x3 = jax.random.normal(k5, (512, 512), dtype=jnp.float32)
    w3, b3 = init_linear_params(k6, 512, 512, bias=True)
    p3 = prepare_linear_params(w3, b3)
    y3 = jax.block_until_ready(pallas_linear(x3, p3))
    y3_ref = jnp.dot(x3, w3.T, precision="highest") + b3
    assert y3.shape == (512, 512)
    assert jnp.allclose(y3, y3_ref, atol=2e-3, rtol=2e-3), "mismatch (pallas, bias)"

    print("KERNEL_OK")
</pallas_src>

<mosaic_0001>
module attributes {stable_mosaic.version = 11 : i64} {
  func.func @_kernel_f32_nobias(%arg0: i32, %arg1: i32, %arg2: i32, %arg3: memref<200x256xf32, #tpu.memory_space<vmem>>, %arg4: memref<256x256xf32, #tpu.memory_space<vmem>>, %arg5: memref<200x256xf32, #tpu.memory_space<vmem>>) attributes {dimension_semantics = [#tpu.dimension_semantics<parallel>, #tpu.dimension_semantics<parallel>, #tpu.dimension_semantics<arbitrary>], iteration_bounds = array<i64: 1, 1, 1>, scalar_prefetch = 0 : i64, scratch_operands = 0 : i64, tpu.core_type = #tpu.core_type<tc>, window_params = [{transform_indices = @transform_0, window_bounds = array<i64: 200, 256>}, {transform_indices = @transform_1, window_bounds = array<i64: 256, 256>}, {transform_indices = @transform_2, window_bounds = array<i64: 200, 256>}]} {
    %c0 = arith.constant 0 : index
    %c0_0 = arith.constant 0 : index
    %0 = vector.load %arg3[%c0, %c0_0] : memref<200x256xf32, #tpu.memory_space<vmem>>, vector<200x256xf32>
    %c0_1 = arith.constant 0 : index
    %c0_2 = arith.constant 0 : index
    %1 = vector.load %arg4[%c0_1, %c0_2] : memref<256x256xf32, #tpu.memory_space<vmem>>, vector<256x256xf32>
    %cst = arith.constant dense<0.000000e+00> : vector<200x256xf32>
    %2 = tpu.matmul %0, %1, %cst {dimension_numbers = #tpu.dot_dimension_numbers<[1], [0], [0], [1], [0, 0, 1, 1], [], []>} : vector<200x256xf32>, vector<256x256xf32>, vector<200x256xf32> -> vector<200x256xf32>
    %c0_i32 = arith.constant 0 : i32
    %3 = arith.cmpi eq, %arg2, %c0_i32 : i32
    %4 = arith.extui %3 : i1 to i32
    %c0_i32_3 = arith.constant 0 : i32
    %5 = arith.cmpi ne, %4, %c0_i32_3 : i32
    scf.if %5 {
      %c0_6 = arith.constant 0 : index
      %c0_7 = arith.constant 0 : index
      %9 = vector.load %arg5[%c0_6, %c0_7] : memref<200x256xf32, #tpu.memory_space<vmem>>, vector<200x256xf32>
      tpu.vector_store %arg5[%c0_6, %c0_7], %2 {strides = array<i32>} : memref<200x256xf32, #tpu.memory_space<vmem>>, vector<200x256xf32>,
    } else {
    }
    %c0_i32_4 = arith.constant 0 : i32
    %6 = arith.cmpi sgt, %arg2, %c0_i32_4 : i32
    %7 = arith.extui %6 : i1 to i32
    %c0_i32_5 = arith.constant 0 : i32
    %8 = arith.cmpi ne, %7, %c0_i32_5 : i32
    scf.if %8 {
      %c0_6 = arith.constant 0 : index
      %c0_7 = arith.constant 0 : index
      %9 = vector.load %arg5[%c0_6, %c0_7] : memref<200x256xf32, #tpu.memory_space<vmem>>, vector<200x256xf32>
      %10 = arith.addf %9, %2 : vector<200x256xf32>
      %c0_8 = arith.constant 0 : index
      %c0_9 = arith.constant 0 : index
      %11 = vector.load %arg5[%c0_8, %c0_9] : memref<200x256xf32, #tpu.memory_space<vmem>>, vector<200x256xf32>
      tpu.vector_store %arg5[%c0_8, %c0_9], %10 {strides = array<i32>} : memref<200x256xf32, #tpu.memory_space<vmem>>, vector<200x256xf32>,
    } else {
    }
    return
  }
  func.func @transform_0(%arg0: i32, %arg1: i32, %arg2: i32) -> (i32, i32) {
    %c0_i32 = arith.constant 0 : i32
    return %arg0, %arg2 : i32, i32
  }
  func.func @transform_1(%arg0: i32, %arg1: i32, %arg2: i32) -> (i32, i32) {
    %c0_i32 = arith.constant 0 : i32
    return %arg2, %arg1 : i32, i32
  }
  func.func @transform_2(%arg0: i32, %arg1: i32, %arg2: i32) -> (i32, i32) {
    %c0_i32 = arith.constant 0 : i32
    return %arg0, %arg1 : i32, i32
  }
}

</mosaic_0001>

<bundles_post_ra>
// kernel: tpu_custom_call.1
= control target key start
LH: loop header
LB: loop body
LE: loop exit
PB: predicated region body
PF: predicated region fallthrough
CT: control target
= control target key end

     0   :  { %7 = vsyncpa [#allocation3], 0  ;;  %s833_s0 = inlined_call_operand.hbm [shape: f32[200,256], index: 0, kind: input, shape index: {}]   ;;  %s834_s1 = inlined_call_operand.hbm [shape: f32[256,256], index: 1, kind: input, shape index: {}]   ;;  %s835_s2 = inlined_call_operand.hbm [shape: f32[200,256], index: 2, kind: output, shape index: {}]  }
   0x1   :  { %8 = vsyncpa [#allocation6], 0 }
   0x2   :  { %9 = vsyncpa [#allocation4], 0  ;;  %s768_s9 = smov [#allocation2]   ;;  %s696_s13 = scalar_lea.hbm %s833_s0, 6400 }
   0x3   :  { %s15_s10 = sshll.u32 %s768_s9, 4  ;;  %p697_p0 = scmp.ne.s32.totalorder %s833_s0, %s696_s13  ;;  %s16_s10 = int_to_ptr.vmem [resolvable:$true] %s15_s10 }
   0x4   :  { %p700_p1 = scmp.lt.u32.totalorder %s696_s13, %s833_s0 }
   0x6   :  { %p702_p2 = pnand %p700_p1, %p697_p0 }
   0x8   :  { %705 = shalt.err (!%p702_p2)
}
   0x9   :  { %s706_s18 = scalar_lea.vmem %s16_s10, 6400  ;;  %p711_p4 = scmp.lt.s32.totalorder %s16_s10, %s16_s10 }
   0xa   :  { %p707_p3 = scmp.ne.s32.totalorder %s16_s10, %s706_s18  ;;  %p712_p5 = scmp.lt.s32.totalorder %s706_s18, %s706_s18 }
   0xc   :  { %p713_p6 = por %p712_p5, %p711_p4 }
   0xe   :  { %p714_p7 = pnand %p713_p6, %p707_p3 }
  0x10   :  { %717 = shalt.err (!%p714_p7)
}
  0x11   :  { %s769_s19 = smov 256   ;;  %s770_s20 = smov 16  }
  0x12   :  { %21 = dma.hbm_to_vmem [thread:$0]  %s833_s0, 6400, %s16_s10, [#allocation3], %s769_s19, %s769_s19, %s770_s20  }
  0x13   :  { %s771_s23 = smov [#allocation5]   ;;  %s718_s27 = scalar_lea.hbm %s834_s1, 8192 }
  0x14   :  { %s27_s24 = sshll.u32 %s771_s23, 4  ;;  %p719_p8 = scmp.ne.s32.totalorder %s834_s1, %s718_s27  ;;  %s28_s24 = int_to_ptr.vmem [resolvable:$true] %s27_s24 }
  0x15   :  { %p722_p9 = scmp.lt.u32.totalorder %s718_s27, %s834_s1 }
  0x17   :  { %p724_p10 = pnand %p722_p9, %p719_p8 }
  0x19   :  { %727 = shalt.err (!%p724_p10)
}
  0x1a   :  { %s728_s4 = scalar_lea.vmem %s28_s24, 8192  ;;  %p733_p12 = scmp.lt.s32.totalorder %s28_s24, %s28_s24 }
  0x1b   :  { %p729_p11 = scmp.ne.s32.totalorder %s28_s24, %s728_s4  ;;  %p734_p13 = scmp.lt.s32.totalorder %s728_s4, %s728_s4 }
  0x1d   :  { %p735_p0 = por %p734_p13, %p733_p12 }
  0x1f   :  { %p736_p1 = pnand %p735_p0, %p729_p11 }
  0x21   :  { %739 = shalt.err (!%p736_p1)
}
  0x22   :  { %33 = dma.hbm_to_vmem [thread:$0]  %s834_s1, 8192, %s28_s24, [#allocation6], %s769_s19, %s769_s19, %s770_s20  }
  0x23   :  { %762 = dma.done.wait [#allocation3], 6400  }
  0x24   :  { %763 = vsyncadd [#allocation3], 4294960896 }
  0x25   :  { %764 = dma.done.wait [#allocation6], 8192  }
  0x26   :  { %765 = vsyncadd [#allocation6], 4294959104  ;;  %v91_v0 = vld [vmem:[#allocation5 + $0x8] sm:$0xff]  ;;  %v93_v1 = vld [vmem:[#allocation5 + $0x18] sm:$0xff]  ;;  %s772_s1 = smov [#allocation7]  }
  0x27   :  { %v90_v2 = vld [vmem:[#allocation5] sm:$0xff]  ;;  %v595_v3 = vpack.c.bf16 %v93_v1, %v91_v0  ;;  %v92_v4 = vld [vmem:[#allocation5 + $0x10] sm:$0xff]  ;;  %v95_v5 = vld [vmem:[#allocation5 + $0x28] sm:$0xff]  ;;  %s582_s6 = sshll.u32 %s772_s1, 4  ;;  %s583_s6 = int_to_ptr.vmem [resolvable:$true] %s582_s6 }
  0x28   :  { %v97_v6 = vld [vmem:[#allocation5 + $0x38] sm:$0xff]  ;;  %v597_v7 = vpack.c.bf16 %v92_v4, %v90_v2  ;;  %v94_v9 = vld [vmem:[#allocation5 + $0x20] sm:$0xff]  ;;  %v96_v10 = vld [vmem:[#allocation5 + $0x30] sm:$0xff]  ;;  %s740_s7 = scalar_lea.vmem %s583_s6, 6400  ;;  %p745_p3 = scmp.lt.s32.totalorder %s583_s6, %s583_s6 }
  0x29   :  { %v599_v8 = vpack.c.bf16 %v97_v6, %v95_v5  ;;  %v99_v11 = vld [vmem:[#allocation5 + $0x48] sm:$0xff]  ;;  %596 = vmatprep.subr.bf16.mxu0 %v595_v3  ;;  %659 = vmatprep.subr.bf16.mxu1 %v595_v3  ;;  %v101_v12 = vld [vmem:[#allocation5 + $0x58] sm:$0xff]  ;;  %v601_v13 = vpack.c.bf16 %v96_v10, %v94_v9  ;;  %v98_v15 = vld [vmem:[#allocation5 + $0x40] sm:$0xff]  ;;  %p741_p2 = scmp.ne.s32.totalorder %s583_s6, %s740_s7  ;;  %p746_p4 = scmp.lt.s32.totalorder %s740_s7, %s740_s7 }
  0x2a   :  { %598 = vmatpush1.bf16.msra.mxu0 %v597_v7  ;;  %675 = vmatpush1.bf16.msra.mxu1 %v597_v7  ;;  %v603_v14 = vpack.c.bf16 %v101_v12, %v99_v11  ;;  %v100_v16 = vld [vmem:[#allocation5 + $0x50] sm:$0xff]  ;;  %v103_v17 = vld [vmem:[#allocation5 + $0x68] sm:$0xff]  ;;  %v105_v18 = vld [vmem:[#allocation5 + $0x78] sm:$0xff] }
  0x2b   :  { %600 = vmatprep.subr.bf16.mxu0 %v599_v8  ;;  %660 = vmatprep.subr.bf16.mxu1 %v599_v8  ;;  %v605_v19 = vpack.c.bf16 %v100_v16, %v98_v15  ;;  %v607_v20 = vpack.c.bf16 %v105_v18, %v103_v17  ;;  %v102_v21 = vld [vmem:[#allocation5 + $0x60] sm:$0xff]  ;;  %v104_v22 = vld [vmem:[#allocation5 + $0x70] sm:$0xff]  ;;  %v107_v23 = vld [vmem:[#allocation5 + $0x88] sm:$0xff]  ;;  %p747_p5 = por %p746_p4, %p745_p3 }
  0x2c   :  { %v109_v24 = vld [vmem:[#allocation5 + $0x98] sm:$0xff]  ;;  %v609_v25 = vpack.c.bf16 %v104_v22, %v102_v21  ;;  %v106_v27 = vld [vmem:[#allocation5 + $0x80] sm:$0xff]  ;;  %v108_v28 = vld [vmem:[#allocation5 + $0x90] sm:$0xff] }
  0x2d   :  { %v611_v26 = vpack.c.bf16 %v109_v24, %v107_v23  ;;  %v111_v29 = vld [vmem:[#allocation5 + $0xa8] sm:$0xff]  ;;  %v113_v30 = vld [vmem:[#allocation5 + $0xb8] sm:$0xff]  ;;  %v613_v31 = vpack.c.bf16 %v108_v28, %v106_v27  ;;  %v110_v33 = vld [vmem:[#allocation5 + $0xa0] sm:$0xff]  ;;  %p748_p6 = pnand %p747_p5, %p741_p2 }
  0x2e   :  { %602 = vmatpush1.bf16.msra.mxu0 %v601_v13  ;;  %676 = vmatpush1.bf16.msra.mxu1 %v601_v13  ;;  %v615_v32 = vpack.c.bf16 %v113_v30, %v111_v29  ;;  %v112_v34 = vld [vmem:[#allocation5 + $0xb0] sm:$0xff]  ;;  %v115_v35 = vld [vmem:[#allocation5 + $0xc8] sm:$0xff]  ;;  %v117_v36 = vld [vmem:[#allocation5 + $0xd8] sm:$0xff] }
  0x2f   :  { %604 = vmatprep.subr.bf16.mxu0 %v603_v14  ;;  %661 = vmatprep.subr.bf16.mxu1 %v603_v14  ;;  %v617_v37 = vpack.c.bf16 %v112_v34, %v110_v33  ;;  %v619_v38 = vpack.c.bf16 %v117_v36, %v115_v35  ;;  %v114_v39 = vld [vmem:[#allocation5 + $0xc0] sm:$0xff]  ;;  %v116_v40 = vld [vmem:[#allocation5 + $0xd0] sm:$0xff]  ;;  %v41_v41 = vld [vmem:[#allocation2 + $0x8] sm:$0xff] }
  0x30   :  { %v119_v42 = vld [vmem:[#allocation5 + $0xe8] sm:$0xff]  ;;  %v121_v43 = vld [vmem:[#allocation5 + $0xf8] sm:$0xff]  ;;  %218 = vmatprep.mubr.f32.mxu0 %v41_v41  ;;  %v621_v45 = vpack.c.bf16 %v116_v40, %v114_v39  ;;  %v118_v47 = vld [vmem:[#allocation5 + $0xe0] sm:$0xff] }
  0x31   :  { %v67_v44 = vld [vmem:[#allocation2 + $0xd8] sm:$0xff]  ;;  %v623_v46 = vpack.c.bf16 %v121_v43, %v119_v42  ;;  %v120_v48 = vld [vmem:[#allocation5 + $0xf0] sm:$0xff]  ;;  %v125_v50 = vld [vmem:[#allocation5 + $0x118] sm:$0xff] }
  0x32   :  { %606 = vmatpush1.bf16.msra.mxu0 %v605_v19  ;;  %677 = vmatpush1.bf16.msra.mxu1 %v605_v19  ;;  %v123_v49 = vld [vmem:[#allocation5 + $0x108] sm:$0xff]  ;;  %v625_v51 = vpack.c.bf16 %v120_v48, %v118_v47  ;;  %v122_v53 = vld [vmem:[#allocation5 + $0x100] sm:$0xff]  ;;  %v124_v54 = vld [vmem:[#allocation5 + $0x110] sm:$0xff] }
  0x33   :  { %608 = vmatprep.subr.bf16.mxu0 %v607_v20  ;;  %662 = vmatprep.subr.bf16.mxu1 %v607_v20  ;;  %v627_v52 = vpack.c.bf16 %v125_v50, %v123_v49  ;;  %v127_v55 = vld [vmem:[#allocation5 + $0x128] sm:$0xff]  ;;  %v129_v56 = vld [vmem:[#allocation5 + $0x138] sm:$0xff]  ;;  %v629_v57 = vpack.c.bf16 %v124_v54, %v122_v53  ;;  %v126_v59 = vld [vmem:[#allocation5 + $0x120] sm:$0xff] }
  0x34   :  { %296 = vmatprep.mubr.f32.mxu1 %v67_v44  ;;  %v631_v58 = vpack.c.bf16 %v129_v56, %v127_v55  ;;  %v128_v60 = vld [vmem:[#allocation5 + $0x130] sm:$0xff]  ;;  %v131_v61 = vld [vmem:[#allocation5 + $0x148] sm:$0xff]  ;;  %v133_v62 = vld [vmem:[#allocation5 + $0x158] sm:$0xff] }
  0x35   :  { %v633_v63 = vpack.c.bf16 %v128_v60, %v126_v59  ;;  %v635_v0 = vpack.c.bf16 %v133_v62, %v131_v61  ;;  %v130_v1 = vld [vmem:[#allocation5 + $0x140] sm:$0xff]  ;;  %v132_v2 = vld [vmem:[#allocation5 + $0x150] sm:$0xff]  ;;  %v135_v3 = vld [vmem:[#allocation5 + $0x168] sm:$0xff] }
  0x36   :  { %610 = vmatpush1.bf16.msra.mxu0 %v609_v25  ;;  %678 = vmatpush1.bf16.msra.mxu1 %v609_v25  ;;  %v137_v4 = vld [vmem:[#allocation5 + $0x178] sm:$0xff]  ;;  %v637_v5 = vpack.c.bf16 %v132_v2, %v130_v1  ;;  %v134_v7 = vld [vmem:[#allocation5 + $0x160] sm:$0xff]  ;;  %v136_v8 = vld [vmem:[#allocation5 + $0x170] sm:$0xff] }
  0x37   :  { %612 = vmatprep.subr.bf16.mxu0 %v611_v26  ;;  %663 = vmatprep.subr.bf16.mxu1 %v611_v26  ;;  %v639_v6 = vpack.c.bf16 %v137_v4, %v135_v3  ;;  %v139_v9 = vld [vmem:[#allocation5 + $0x188] sm:$0xff]  ;;  %v141_v10 = vld [vmem:[#allocation5 + $0x198] sm:$0xff]  ;;  %v641_v11 = vpack.c.bf16 %v136_v8, %v134_v7  ;;  %v138_v13 = vld [vmem:[#allocation5 + $0x180] sm:$0xff] }
  0x38   :  { %v643_v12 = vpack.c.bf16 %v141_v10, %v139_v9  ;;  %v140_v14 = vld [vmem:[#allocation5 + $0x190] sm:$0xff]  ;;  %v143_v15 = vld [vmem:[#allocation5 + $0x1a8] sm:$0xff]  ;;  %v145_v16 = vld [vmem:[#allocation5 + $0x1b8] sm:$0xff] }
  0x39   :  { %v645_v17 = vpack.c.bf16 %v140_v14, %v138_v13  ;;  %v647_v18 = vpack.c.bf16 %v145_v16, %v143_v15  ;;  %v142_v19 = vld [vmem:[#allocation5 + $0x1a0] sm:$0xff]  ;;  %v144_v20 = vld [vmem:[#allocation5 + $0x1b0] sm:$0xff]  ;;  %v147_v21 = vld [vmem:[#allocation5 + $0x1c8] sm:$0xff] }
  0x3a   :  { %614 = vmatpush1.bf16.msra.mxu0 %v613_v31  ;;  %679 = vmatpush1.bf16.msra.mxu1 %v613_v31  ;;  %v149_v22 = vld [vmem:[#allocation5 + $0x1d8] sm:$0xff]  ;;  %v649_v23 = vpack.c.bf16 %v144_v20, %v142_v19  ;;  %v146_v25 = vld [vmem:[#allocation5 + $0x1c0] sm:$0xff]  ;;  %v148_v26 = vld [vmem:[#allocation5 + $0x1d0] sm:$0xff] }
  0x3b   :  { %616 = vmatprep.subr.bf16.mxu0 %v615_v32  ;;  %664 = vmatprep.subr.bf16.mxu1 %v615_v32  ;;  %v651_v24 = vpack.c.bf16 %v149_v22, %v147_v21  ;;  %v151_v27 = vld [vmem:[#allocation5 + $0x1e8] sm:$0xff]  ;;  %v153_v28 = vld [vmem:[#allocation5 + $0x1f8] sm:$0xff]  ;;  %v653_v29 = vpack.c.bf16 %v148_v26, %v146_v25  ;;  %v150_v31 = vld [vmem:[#allocation5 + $0x1e0] sm:$0xff] }
  0x3c   :  { %v655_v30 = vpack.c.bf16 %v153_v28, %v151_v27  ;;  %v152_v32 = vld [vmem:[#allocation5 + $0x1f0] sm:$0xff]  ;;  %v66_v35 = vld [vmem:[#allocation2 + $0xd0] sm:$0xff]  ;;  %v43_v36 = vld [vmem:[#allocation2 + $0x18] sm:$0xff] }
  0x3d   :  { %v657_v33 = vpack.c.bf16 %v152_v32, %v150_v31  ;;  %v40_v34 = vld [vmem:[#allocation2] sm:$0xff]  ;;  %v45_v40 = vld [vmem:[#allocation2 + $0x28] sm:$0xff]  ;;  %v71_v41 = vld [vmem:[#allocation2 + $0xf8] sm:$0xff] }
  0x3e   :  { %618 = vmatpush1.bf16.msra.mxu0 %v617_v37  ;;  %680 = vmatpush1.bf16.msra.mxu1 %v617_v37  ;;  %v69_v37 = vld [vmem:[#allocation2 + $0xe8] sm:$0xff]  ;;  %v68_v39 = vld [vmem:[#allocation2 + $0xe0] sm:$0xff]  ;;  %v70_v43 = vld [vmem:[#allocation2 + $0xf0] sm:$0xff] }
  0x3f   :  { %620 = vmatprep.subr.bf16.mxu0 %v619_v38  ;;  %665 = vmatprep.subr.bf16.mxu1 %v619_v38  ;;  %v42_v38 = vld [vmem:[#allocation2 + $0x10] sm:$0xff]  ;;  %v44_v42 = vld [vmem:[#allocation2 + $0x20] sm:$0xff]  ;;  %v47_v44 = vld [vmem:[#allocation2 + $0x38] sm:$0xff] }
  0x40   :  { %v72_v47 = vld [vmem:[#allocation2 + $0x100] sm:$0xff]  ;;  %v49_v48 = vld [vmem:[#allocation2 + $0x48] sm:$0xff]  ;;  %v75_v49 = vld [vmem:[#allocation2 + $0x118] sm:$0xff] }
  0x41   :  { %v48_v50 = vld [vmem:[#allocation2 + $0x40] sm:$0xff]  ;;  %v77_v53 = vld [vmem:[#allocation2 + $0x128] sm:$0xff]  ;;  %v50_v54 = vld [vmem:[#allocation2 + $0x50] sm:$0xff] }
  0x42   :  { %622 = vmatpush1.bf16.msra.mxu0 %v621_v45  ;;  %681 = vmatpush1.bf16.msra.mxu1 %v621_v45  ;;  %v73_v45 = vld [vmem:[#allocation2 + $0x108] sm:$0xff]  ;;  %v76_v55 = vld [vmem:[#allocation2 + $0x120] sm:$0xff]  ;;  %v78_v59 = vld [vmem:[#allocation2 + $0x130] sm:$0xff] }
  0x43   :  { %624 = vmatprep.subr.bf16.mxu0 %v623_v46  ;;  %666 = vmatprep.subr.bf16.mxu1 %v623_v46  ;;  %v46_v46 = vld [vmem:[#allocation2 + $0x30] sm:$0xff]  ;;  %v53_v56 = vld [vmem:[#allocation2 + $0x68] sm:$0xff]  ;;  %v55_v60 = vld [vmem:[#allocation2 + $0x78] sm:$0xff] }
  0x44   :  { %v81_v61 = vld [vmem:[#allocation2 + $0x148] sm:$0xff]  ;;  %v54_v62 = vld [vmem:[#allocation2 + $0x70] sm:$0xff]  ;;  %v83_v1 = vld [vmem:[#allocation2 + $0x158] sm:$0xff] }
  0x45   :  { %v56_v2 = vld [vmem:[#allocation2 + $0x80] sm:$0xff]  ;;  %v82_v3 = vld [vmem:[#allocation2 + $0x150] sm:$0xff]  ;;  %v59_v4 = vld [vmem:[#allocation2 + $0x98] sm:$0xff] }
  0x46   :  { %626 = vmatpush1.bf16.msra.mxu0 %v625_v51  ;;  %682 = vmatpush1.bf16.msra.mxu1 %v625_v51  ;;  %v74_v51 = vld [vmem:[#allocation2 + $0x110] sm:$0xff]  ;;  %v84_v7 = vld [vmem:[#allocation2 + $0x160] sm:$0xff]  ;;  %v61_v8 = vld [vmem:[#allocation2 + $0xa8] sm:$0xff] }
  0x47   :  { %628 = vmatprep.subr.bf16.mxu0 %v627_v52  ;;  %667 = vmatprep.subr.bf16.mxu1 %v627_v52  ;;  %v51_v52 = vld [vmem:[#allocation2 + $0x58] sm:$0xff]  ;;  %v60_v10 = vld [vmem:[#allocation2 + $0xa0] sm:$0xff]  ;;  %v89_v13 = vld [vmem:[#allocation2 + $0x188] sm:$0xff] }
  0x48   :  { %v87_v9 = vld [vmem:[#allocation2 + $0x178] sm:$0xff]  ;;  %v62_v14 = vld [vmem:[#allocation2 + $0xb0] sm:$0xff]  ;;  %v88_v15 = vld [vmem:[#allocation2 + $0x180] sm:$0xff] }
  0x49   :  { %v65_v16 = vld [vmem:[#allocation2 + $0xc8] sm:$0xff] }
  0x4a   :  { %630 = vmatpush1.bf16.msra.mxu0 %v629_v57  ;;  %683 = vmatpush1.bf16.msra.mxu1 %v629_v57  ;;  %v79_v57 = vld [vmem:[#allocation2 + $0x138] sm:$0xff] }
  0x4b   :  { %632 = vmatprep.subr.bf16.mxu0 %v631_v58  ;;  %668 = vmatprep.subr.bf16.mxu1 %v631_v58  ;;  %v52_v58 = vld [vmem:[#allocation2 + $0x60] sm:$0xff] }
  0x4e   :  { %634 = vmatpush1.bf16.msra.mxu0 %v633_v63  ;;  %684 = vmatpush1.bf16.msra.mxu1 %v633_v63  ;;  %v80_v63 = vld [vmem:[#allocation2 + $0x140] sm:$0xff] }
  0x4f   :  { %636 = vmatprep.subr.bf16.mxu0 %v635_v0  ;;  %669 = vmatprep.subr.bf16.mxu1 %v635_v0  ;;  %v57_v0 = vld [vmem:[#allocation2 + $0x88] sm:$0xff] }
  0x52   :  { %638 = vmatpush1.bf16.msra.mxu0 %v637_v5  ;;  %685 = vmatpush1.bf16.msra.mxu1 %v637_v5  ;;  %v85_v5 = vld [vmem:[#allocation2 + $0x168] sm:$0xff] }
  0x53   :  { %640 = vmatprep.subr.bf16.mxu0 %v639_v6  ;;  %670 = vmatprep.subr.bf16.mxu1 %v639_v6  ;;  %v58_v6 = vld [vmem:[#allocation2 + $0x90] sm:$0xff] }
  0x56   :  { %642 = vmatpush1.bf16.msra.mxu0 %v641_v11  ;;  %686 = vmatpush1.bf16.msra.mxu1 %v641_v11  ;;  %v86_v11 = vld [vmem:[#allocation2 + $0x170] sm:$0xff] }
  0x57   :  { %644 = vmatprep.subr.bf16.mxu0 %v643_v12  ;;  %671 = vmatprep.subr.bf16.mxu1 %v643_v12  ;;  %v63_v12 = vld [vmem:[#allocation2 + $0xb8] sm:$0xff] }
  0x5a   :  { %646 = vmatpush1.bf16.msra.mxu0 %v645_v17  ;;  %687 = vmatpush1.bf16.msra.mxu1 %v645_v17  ;;  %v64_v17 = vld [vmem:[#allocation2 + $0xc0] sm:$0xff] }
  0x5b   :  { %648 = vmatprep.subr.bf16.mxu0 %v647_v18  ;;  %672 = vmatprep.subr.bf16.mxu1 %v647_v18 }
  0x5e   :  { %650 = vmatpush1.bf16.msra.mxu0 %v649_v23  ;;  %688 = vmatpush1.bf16.msra.mxu1 %v649_v23 }
  0x5f   :  { %652 = vmatprep.subr.bf16.mxu0 %v651_v24  ;;  %673 = vmatprep.subr.bf16.mxu1 %v651_v24 }
  0x62   :  { %654 = vmatpush1.bf16.msra.mxu0 %v653_v29  ;;  %689 = vmatpush1.bf16.msra.mxu1 %v653_v29 }
  0x63   :  { %656 = vmatprep.subr.bf16.mxu0 %v655_v30  ;;  %674 = vmatprep.subr.bf16.mxu1 %v655_v30 }
  0x66   :  { %658 = vmatpush1.bf16.msra.mxu0 %v657_v33  ;;  %690 = vmatpush1.bf16.msra.mxu1 %v657_v33 }
  0x69   :  { %219 = vmatmul.mubr.f32.vlgmr.msra.gmra.mrb[0].mxu0 %v40_v34  ;;  %297 = vmatmul.mubr.f32.vlgmr.msra.gmra.mrb[0].mxu1 %v66_v35 }
  0x6a   :  { %224 = vmatprep.mubr.f32.mxu0 %v43_v36  ;;  %302 = vmatprep.mubr.f32.mxu1 %v69_v37 }
  0x6d   :  { %225 = vmatmul.mubr.f32.gmra.mrb[2].mxu0 %v42_v38  ;;  %303 = vmatmul.mubr.f32.gmra.mrb[2].mxu1 %v68_v39 }
  0x6e   :  { %230 = vmatprep.mubr.f32.mxu0 %v45_v40  ;;  %308 = vmatprep.mubr.f32.mxu1 %v71_v41 }
  0x71   :  { %231 = vmatmul.mubr.f32.gmra.mrb[4].mxu0 %v44_v42  ;;  %309 = vmatmul.mubr.f32.gmra.mrb[4].mxu1 %v70_v43 }
  0x72   :  { %236 = vmatprep.mubr.f32.mxu0 %v47_v44  ;;  %314 = vmatprep.mubr.f32.mxu1 %v73_v45 }
  0x75   :  { %237 = vmatmul.mubr.f32.gmra.mrb[6].mxu0 %v46_v46  ;;  %315 = vmatmul.mubr.f32.gmra.mrb[6].mxu1 %v72_v47 }
  0x76   :  { %242 = vmatprep.mubr.f32.mxu0 %v49_v48  ;;  %320 = vmatprep.mubr.f32.mxu1 %v75_v49 }
  0x79   :  { %243 = vmatmul.mubr.f32.gmra.mrb[8].mxu0 %v48_v50  ;;  %321 = vmatmul.mubr.f32.gmra.mrb[8].mxu1 %v74_v51 }
  0x7a   :  { %248 = vmatprep.mubr.f32.mxu0 %v51_v52  ;;  %326 = vmatprep.mubr.f32.mxu1 %v77_v53 }
  0x7d   :  { %249 = vmatmul.mubr.f32.gmra.mrb[10].mxu0 %v50_v54  ;;  %327 = vmatmul.mubr.f32.gmra.mrb[10].mxu1 %v76_v55 }
  0x7e   :  { %254 = vmatprep.mubr.f32.mxu0 %v53_v56  ;;  %332 = vmatprep.mubr.f32.mxu1 %v79_v57 }
  0x81   :  { %255 = vmatmul.mubr.f32.gmra.mrb[12].mxu0 %v52_v58  ;;  %333 = vmatmul.mubr.f32.gmra.mrb[12].mxu1 %v78_v59 }
  0x82   :  { %260 = vmatprep.mubr.f32.mxu0 %v55_v60  ;;  %338 = vmatprep.mubr.f32.mxu1 %v81_v61 }
  0x85   :  { %261 = vmatmul.mubr.f32.gmra.mrb[14].mxu0 %v54_v62  ;;  %339 = vmatmul.mubr.f32.gmra.mrb[14].mxu1 %v80_v63 }
  0x86   :  { %266 = vmatprep.mubr.f32.mxu0 %v57_v0  ;;  %344 = vmatprep.mubr.f32.mxu1 %v83_v1 }
  0x89   :  { %267 = vmatmul.mubr.f32.gmra.mrb[16].mxu0 %v56_v2  ;;  %345 = vmatmul.mubr.f32.gmra.mrb[16].mxu1 %v82_v3 }
  0x8a   :  { %272 = vmatprep.mubr.f32.mxu0 %v59_v4  ;;  %350 = vmatprep.mubr.f32.mxu1 %v85_v5 }
  0x8d   :  { %273 = vmatmul.mubr.f32.gmra.mrb[18].mxu0 %v58_v6  ;;  %351 = vmatmul.mubr.f32.gmra.mrb[18].mxu1 %v84_v7 }
  0x8e   :  { %278 = vmatprep.mubr.f32.mxu0 %v61_v8  ;;  %356 = vmatprep.mubr.f32.mxu1 %v87_v9 }
  0x91   :  { %279 = vmatmul.mubr.f32.gmra.mrb[20].mxu0 %v60_v10  ;;  %357 = vmatmul.mubr.f32.gmra.mrb[20].mxu1 %v86_v11 }
  0x92   :  { %284 = vmatprep.mubr.f32.mxu0 %v63_v12  ;;  %362 = vmatprep.mubr.f32.mxu1 %v89_v13 }
  0x95   :  { %285 = vmatmul.mubr.f32.gmra.mrb[22].mxu0 %v62_v14  ;;  %363 = vmatmul.mubr.f32.gmra.mrb[22].mxu1 %v88_v15 }
  0x96   :  { %290 = vmatprep.mubr.f32.mxu0 %v65_v16 }
  0x99   :  { %291 = vmatmul.mubr.f32.gmra.mrb[24].mxu0 %v64_v17 }
 0x13c   :  { %v220_v18 = vpop.f32.mrb[0].mxu0  ;;  %v298_v19 = vpop.f32.mrb[0].mxu1 }
 0x13d   :  { %373 = vst [vmem:[#allocation7] sm:$0xff] %v220_v18  ;;  %v222_v20 = vpop.f32.mrb[1].mxu0  ;;  %399 = vst [vmem:[#allocation7 + $0xd0] sm:$0xff] %v298_v19  ;;  %v300_v21 = vpop.f32.mrb[1].mxu1 }
 0x13e   :  { %374 = vst [vmem:[#allocation7 + $0x8] sm:$0xff] %v222_v20  ;;  %400 = vst [vmem:[#allocation7 + $0xd8] sm:$0xff] %v300_v21 }
 0x140   :  { %v226_v22 = vpop.f32.mrb[2].mxu0  ;;  %v304_v23 = vpop.f32.mrb[2].mxu1 }
 0x141   :  { %375 = vst [vmem:[#allocation7 + $0x10] sm:$0xff] %v226_v22  ;;  %v228_v24 = vpop.f32.mrb[3].mxu0  ;;  %401 = vst [vmem:[#allocation7 + $0xe0] sm:$0xff] %v304_v23  ;;  %v306_v25 = vpop.f32.mrb[3].mxu1 }
 0x142   :  { %376 = vst [vmem:[#allocation7 + $0x18] sm:$0xff] %v228_v24  ;;  %402 = vst [vmem:[#allocation7 + $0xe8] sm:$0xff] %v306_v25 }
 0x144   :  { %v232_v26 = vpop.f32.mrb[4].mxu0  ;;  %v310_v27 = vpop.f32.mrb[4].mxu1 }
 0x145   :  { %377 = vst [vmem:[#allocation7 + $0x20] sm:$0xff] %v232_v26  ;;  %v234_v28 = vpop.f32.mrb[5].mxu0  ;;  %403 = vst [vmem:[#allocation7 + $0xf0] sm:$0xff] %v310_v27  ;;  %v312_v29 = vpop.f32.mrb[5].mxu1 }
 0x146   :  { %378 = vst [vmem:[#allocation7 + $0x28] sm:$0xff] %v234_v28  ;;  %404 = vst [vmem:[#allocation7 + $0xf8] sm:$0xff] %v312_v29 }
 0x148   :  { %v238_v30 = vpop.f32.mrb[6].mxu0  ;;  %v316_v31 = vpop.f32.mrb[6].mxu1 }
 0x149   :  { %379 = vst [vmem:[#allocation7 + $0x30] sm:$0xff] %v238_v30  ;;  %v240_v32 = vpop.f32.mrb[7].mxu0  ;;  %405 = vst [vmem:[#allocation7 + $0x100] sm:$0xff] %v316_v31  ;;  %v318_v33 = vpop.f32.mrb[7].mxu1 }
 0x14a   :  { %380 = vst [vmem:[#allocation7 + $0x38] sm:$0xff] %v240_v32  ;;  %406 = vst [vmem:[#allocation7 + $0x108] sm:$0xff] %v318_v33 }
 0x14c   :  { %v244_v34 = vpop.f32.mrb[8].mxu0  ;;  %v322_v35 = vpop.f32.mrb[8].mxu1 }
 0x14d   :  { %381 = vst [vmem:[#allocation7 + $0x40] sm:$0xff] %v244_v34  ;;  %v246_v36 = vpop.f32.mrb[9].mxu0  ;;  %407 = vst [vmem:[#allocation7 + $0x110] sm:$0xff] %v322_v35  ;;  %v324_v37 = vpop.f32.mrb[9].mxu1 }
 0x14e   :  { %382 = vst [vmem:[#allocation7 + $0x48] sm:$0xff] %v246_v36  ;;  %408 = vst [vmem:[#allocation7 + $0x118] sm:$0xff] %v324_v37 }
 0x150   :  { %v250_v38 = vpop.f32.mrb[10].mxu0  ;;  %v328_v39 = vpop.f32.mrb[10].mxu1 }
 0x151   :  { %383 = vst [vmem:[#allocation7 + $0x50] sm:$0xff] %v250_v38  ;;  %v252_v40 = vpop.f32.mrb[11].mxu0  ;;  %409 = vst [vmem:[#allocation7 + $0x120] sm:$0xff] %v328_v39  ;;  %v330_v41 = vpop.f32.mrb[11].mxu1 }
 0x152   :  { %384 = vst [vmem:[#allocation7 + $0x58] sm:$0xff] %v252_v40  ;;  %410 = vst [vmem:[#allocation7 + $0x128] sm:$0xff] %v330_v41 }
 0x154   :  { %v256_v42 = vpop.f32.mrb[12].mxu0  ;;  %v334_v43 = vpop.f32.mrb[12].mxu1 }
 0x155   :  { %385 = vst [vmem:[#allocation7 + $0x60] sm:$0xff] %v256_v42  ;;  %v258_v44 = vpop.f32.mrb[13].mxu0  ;;  %411 = vst [vmem:[#allocation7 + $0x130] sm:$0xff] %v334_v43  ;;  %v336_v45 = vpop.f32.mrb[13].mxu1 }
 0x156   :  { %386 = vst [vmem:[#allocation7 + $0x68] sm:$0xff] %v258_v44  ;;  %412 = vst [vmem:[#allocation7 + $0x138] sm:$0xff] %v336_v45 }
 0x158   :  { %v262_v46 = vpop.f32.mrb[14].mxu0  ;;  %v340_v47 = vpop.f32.mrb[14].mxu1 }
 0x159   :  { %387 = vst [vmem:[#allocation7 + $0x70] sm:$0xff] %v262_v46  ;;  %v264_v48 = vpop.f32.mrb[15].mxu0  ;;  %413 = vst [vmem:[#allocation7 + $0x140] sm:$0xff] %v340_v47  ;;  %v342_v49 = vpop.f32.mrb[15].mxu1 }
 0x15a   :  { %388 = vst [vmem:[#allocation7 + $0x78] sm:$0xff] %v264_v48  ;;  %414 = vst [vmem:[#allocation7 + $0x148] sm:$0xff] %v342_v49 }
 0x15c   :  { %v268_v50 = vpop.f32.mrb[16].mxu0  ;;  %v346_v51 = vpop.f32.mrb[16].mxu1 }
 0x15d   :  { %389 = vst [vmem:[#allocation7 + $0x80] sm:$0xff] %v268_v50  ;;  %v270_v52 = vpop.f32.mrb[17].mxu0  ;;  %415 = vst [vmem:[#allocation7 + $0x150] sm:$0xff] %v346_v51  ;;  %v348_v53 = vpop.f32.mrb[17].mxu1 }
 0x15e   :  { %390 = vst [vmem:[#allocation7 + $0x88] sm:$0xff] %v270_v52  ;;  %416 = vst [vmem:[#allocation7 + $0x158] sm:$0xff] %v348_v53 }
 0x160   :  { %v274_v54 = vpop.f32.mrb[18].mxu0  ;;  %v352_v55 = vpop.f32.mrb[18].mxu1 }
 0x161   :  { %391 = vst [vmem:[#allocation7 + $0x90] sm:$0xff] %v274_v54  ;;  %v276_v56 = vpop.f32.mrb[19].mxu0  ;;  %417 = vst [vmem:[#allocation7 + $0x160] sm:$0xff] %v352_v55  ;;  %v354_v57 = vpop.f32.mrb[19].mxu1 }
 0x162   :  { %392 = vst [vmem:[#allocation7 + $0x98] sm:$0xff] %v276_v56  ;;  %418 = vst [vmem:[#allocation7 + $0x168] sm:$0xff] %v354_v57 }
 0x164   :  { %v280_v58 = vpop.f32.mrb[20].mxu0  ;;  %v358_v59 = vpop.f32.mrb[20].mxu1 }
 0x165   :  { %393 = vst [vmem:[#allocation7 + $0xa0] sm:$0xff] %v280_v58  ;;  %v282_v60 = vpop.f32.mrb[21].mxu0  ;;  %419 = vst [vmem:[#allocation7 + $0x170] sm:$0xff] %v358_v59  ;;  %v360_v61 = vpop.f32.mrb[21].mxu1 }
 0x166   :  { %394 = vst [vmem:[#allocation7 + $0xa8] sm:$0xff] %v282_v60  ;;  %420 = vst [vmem:[#allocation7 + $0x178] sm:$0xff] %v360_v61 }
 0x168   :  { %v286_v62 = vpop.f32.mrb[22].mxu0  ;;  %v364_v63 = vpop.f32.mrb[22].mxu1 }
 0x169   :  { %395 = vst [vmem:[#allocation7 + $0xb0] sm:$0xff] %v286_v62  ;;  %v288_v0 = vpop.f32.mrb[23].mxu0  ;;  %421 = vst [vmem:[#allocation7 + $0x180] sm:$0xff] %v364_v63  ;;  %v366_v1 = vpop.f32.mrb[23].mxu1 }
 0x16a   :  { %396 = vst [vmem:[#allocation7 + $0xb8] sm:$0xff] %v288_v0  ;;  %422 = vst [vmem:[#allocation7 + $0x188] sm:$0xff] %v366_v1 }
 0x16c   :  { %v292_v2 = vpop.f32.mrb[24].mxu0 }
 0x16d   :  { %397 = vst [vmem:[#allocation7 + $0xc0] sm:$0xff] %v292_v2  ;;  %v294_v3 = vpop.f32.mrb[25].mxu0 }
 0x16e   :  { %398 = vst [vmem:[#allocation7 + $0xc8] sm:$0xff] %v294_v3 }
 0x16f   :  { %751 = shalt.err (!%p748_p6)
}
 0x170   :  { %s752_s10 = scalar_lea.hbm %s835_s2, 6400 }
 0x171   :  { %p753_p7 = scmp.ne.s32.totalorder %s835_s2, %s752_s10  ;;  %p756_p8 = scmp.lt.u32.totalorder %s752_s10, %s835_s2 }
 0x173   :  { %p758_p9 = pnand %p756_p8, %p753_p7 }
 0x175   :  { %761 = shalt.err (!%p758_p9)
}
 0x176   :  { %588 = dma.vmem_to_hbm [thread:$0]  %s583_s6, 6400, %s835_s2, [#allocation4], %s769_s19, %s769_s19, %s770_s20  }
 0x177   :  { %766 = dma.done.wait [#allocation4], 6400  }
 0x178   :  { %767 = vsyncadd [#allocation4], 4294960896 }
 0x179   :  { %592 = vsyncpa [#allocation3], 1 }
 0x17a   :  { %593 = vsyncpa [#allocation6], 1 }
 0x17b   :  { %594 = vsyncpa [#allocation4], 1 }

</bundles_post_ra>
